<compile_context>
chip_gen: v7x
topology: tpu7x:2x2x1
jax: 0.10.0
libtpu: 0.0.40
codegen_flags: <defaults>
</compile_context>

<pallas_src>
import math

import jax
import jax.numpy as jnp
from jax.experimental import pallas as pl
from jax.experimental.pallas import tpu as pltpu


def _round_up(x, m):
    return ((x + m - 1) // m) * m


def _make_dqn_kernel(n_valid, tile_b, n_actions):
    """n_valid: true batch size (for masking padded lanes in the adv partial sum)."""

    def kernel(x_ref,
               wc_ref, bc_ref,      # "conv" as matmul   (f0, feat_pad), (f0, 1)
               w1_ref, b1_ref,      # linear[0]          (f1, f0), (f1, 1)
               w2_ref, b2_ref,      # linear[2]          (f1, f1), (f1, 1)
               wh1_ref, bh1_ref,    # fused adv|val hidden (2*f1, f1), (2*f1, 1)
               wh2_ref, bh2_ref,    # fused block-diag out (8, 2*f1), (8, 1)
               q_ref, psum_ref):
        f32 = jnp.float32
        cd = wc_ref.dtype            # matmul compute dtype (bf16 or f32)

        x = x_ref[...]                                                # (F, B)
        h = jnp.maximum(
            jnp.dot(wc_ref[...], x, preferred_element_type=f32) + bc_ref[...], 0.0)
        h = jnp.maximum(
            jnp.dot(w1_ref[...], h.astype(cd), preferred_element_type=f32)
            + b1_ref[...], 0.0)
        h = jnp.maximum(
            jnp.dot(w2_ref[...], h.astype(cd), preferred_element_type=f32)
            + b2_ref[...], 0.0)

        # fused dueling heads, hidden layer: rows [0:f1]=advantage, [f1:2f1]=value
        hh = jnp.maximum(
            jnp.dot(wh1_ref[...], h.astype(cd), preferred_element_type=f32)
            + bh1_ref[...], 0.0)

        # fused block-diagonal output layer:
        #   rows [0:n_actions] = advantage, row [n_actions] = value, rest zero-padded
        o2 = (jnp.dot(wh2_ref[...], hh.astype(cd), preferred_element_type=f32)
              + bh2_ref[...])                                         # (8, B)
        adv = o2[:n_actions, :]                                       # (A, B)
        val = o2[n_actions:n_actions + 1, :]                          # (1, B)

        q_ref[...] = adv + val                                        # value + advantage

        # masked partial sum of advantage (exclude padded batch lanes)
        col = (jax.lax.broadcasted_iota(jnp.int32, adv.shape, 1)
               + pl.program_id(0) * tile_b)
        psum = jnp.sum(jnp.where(col < n_valid, adv, 0.0))
        psum_ref[...] = jnp.zeros((8, 128), f32) + psum

    return kernel


def pack_params(params, use_bf16=True):
    """PyTorch-layout params -> feature-major kernel weights (out_features, in_features)."""
    (cw, cb, w1, b1, w2, b2, wa1, ba1, wa2, ba2, wv1, bv1, wv2, bv2) = params
    wdt = jnp.bfloat16 if use_bf16 else jnp.float32
    f0 = cw.shape[0]
    f1 = wa1.shape[0]
    n_actions = wa2.shape[0]

    # conv kernel spans the full spatial window -> plain (f0, C*KH*KW) matmul weight;
    # pad the tiny K dim to a multiple of 8 (sublane alignment).
    feat = int(cw.size // f0)
    feat_pad = _round_up(feat, 8)
    wc = jnp.zeros((f0, feat_pad), jnp.float32).at[:, :feat].set(cw.reshape(f0, feat))

    # fuse the two head hidden layers into one 128-wide matmul
    wh1 = jnp.concatenate([wa1, wv1], axis=0)          # (2*f1, f1)
    bh1 = jnp.concatenate([ba1, bv1], axis=0)          # (2*f1,)

    # fuse the two head output layers into one block-diagonal matmul, rows padded to 8
    n_head = _round_up(n_actions + 1, 8)
    wh2 = jnp.zeros((n_head, 2 * f1), jnp.float32)
    wh2 = wh2.at[:n_actions, :f1].set(wa2)
    wh2 = wh2.at[n_actions:n_actions + 1, f1:].set(wv2)
    bh2 = jnp.zeros((n_head,), jnp.float32)
    bh2 = bh2.at[:n_actions].set(ba2).at[n_actions].set(bv2[0])

    w = lambda a: a.astype(wdt)
    col = lambda a: a.reshape(-1, 1).astype(jnp.float32)   # biases stay f32 (VPU math)
    return (w(wc), col(cb), w(w1), col(b1), w(w2), col(b2),
            w(wh1), col(bh1), w(wh2), col(bh2))


def dqn_forward(x_nchw, params, *, tile_b=256, use_bf16=True):
    """x_nchw: (N, window, 2, frame_width) -> (N, n_actions) float32."""
    N = x_nchw.shape[0]
    feat = int(math.prod(x_nchw.shape[1:]))
    n_actions = params[8].shape[0]

    packed = pack_params(params, use_bf16=use_bf16)
    wc_k, w1_k, wh1_k, wh2_k = packed[0], packed[2], packed[6], packed[8]
    feat_pad = wc_k.shape[1]
    f0, f1, f1h, n_head = wc_k.shape[0], w1_k.shape[0], wh1_k.shape[0], wh2_k.shape[0]

    # batch tile: multiple of 128 (lane-dense), capped for VMEM/vreg friendliness
    tile_b = max(128, min(_round_up(tile_b, 128), 512))
    tile_b = min(tile_b, _round_up(max(N, 1), 128))
    n_pad = _round_up(max(N, 1), tile_b)
    num_tiles = n_pad // tile_b

    # feature-major, zero-padded input slab (feat_pad, n_pad)
    x_fm = jnp.zeros((feat_pad, n_pad), jnp.float32)
    x_fm = x_fm.at[:feat, :N].set(x_nchw.reshape(N, feat).astype(jnp.float32).T)
    x_fm = x_fm.astype(wc_k.dtype)

    def full_spec(a):
        return pl.BlockSpec(a.shape, lambda i: (0,) * a.ndim)   # resident every step

    in_specs = ([pl.BlockSpec((feat_pad, tile_b), lambda i: (0, i))]
                + [full_spec(a) for a in packed])
    out_specs = [
        pl.BlockSpec((n_actions, tile_b), lambda i: (0, i)),   # q = value + advantage
        pl.BlockSpec((8, 128), lambda i: (0, i)),              # per-tile adv partial sum
    ]
    out_shape = (
        jax.ShapeDtypeStruct((n_actions, n_pad), jnp.float32),
        jax.ShapeDtypeStruct((8, 128 * num_tiles), jnp.float32),
    )

    flops = 2 * n_pad * (feat_pad * f0 + f0 * f1 + f1 * f1 + f1 * f1h + f1h * n_head)
    weight_bytes = sum(int(a.size) * a.dtype.itemsize for a in packed)
    bytes_accessed = (int(x_fm.size) * x_fm.dtype.itemsize
                      + n_actions * n_pad * 4 + 8 * 128 * num_tiles * 4
                      + weight_bytes)

    kernel = _make_dqn_kernel(N, tile_b, n_actions)
    q_fm, psums = pl.pallas_call(
        kernel,
        out_shape=out_shape,
        grid_spec=pltpu.PrefetchScalarGridSpec(
            num_scalar_prefetch=0,
            grid=(num_tiles,),
            in_specs=in_specs,
            out_specs=out_specs,
        ),
        compiler_params=pltpu.CompilerParams(
            dimension_semantics=("parallel",)),
        cost_estimate=pl.CostEstimate(flops=int(flops), transcendentals=0,
                                      bytes_accessed=int(bytes_accessed)),
    )(x_fm, *packed)

    # finalize the global advantage mean (tiny scalar work) and present batch-major
    adv_total = jnp.sum(psums[0, ::128])
    adv_mean = adv_total / (N * n_actions)
    return q_fm[:, :N].T - adv_mean


def init_params(key, n_actions=4, n_filters=(64, 64, 512),
                frame_width=2, window_size=1):
    """Deterministic synthetic parameters, PyTorch layout (out, in) / (out,)."""
    f0, f1 = n_filters[0], n_filters[1]
    conv_in = window_size * 2 * frame_width

    def uniform(k, shape, fan_in):
        bound = 1.0 / math.sqrt(fan_in)
        return jax.random.uniform(k, shape, jnp.float32, -bound, bound)

    keys = jax.random.split(key, 14)
    cw = uniform(keys[0], (f0, window_size, 2, frame_width), conv_in)
    cb = uniform(keys[1], (f0,), conv_in)
    w1 = uniform(keys[2], (f1, f0), f0)
    b1 = uniform(keys[3], (f1,), f0)
    w2 = uniform(keys[4], (f1, f1), f1)
    b2 = uniform(keys[5], (f1,), f1)
    wa1 = uniform(keys[6], (f1, f1), f1)
    ba1 = uniform(keys[7], (f1,), f1)
    wa2 = uniform(keys[8], (n_actions, f1), f1)
    ba2 = uniform(keys[9], (n_actions,), f1)
    wv1 = uniform(keys[10], (f1, f1), f1)
    bv1 = uniform(keys[11], (f1,), f1)
    wv2 = uniform(keys[12], (1, f1), f1)
    bv2 = uniform(keys[13], (1,), f1)
    return (cw, cb, w1, b1, w2, b2, wa1, ba1, wa2, ba2, wv1, bv1, wv2, bv2)


def reference_forward(x_nchw, params):
    """Pure-JAX reference implementing the PyTorch math (batch-major, f32)."""
    (cw, cb, w1, b1, w2, b2, wa1, ba1, wa2, ba2, wv1, bv1, wv2, bv2) = params
    N = x_nchw.shape[0]
    relu = jax.nn.relu
    x = x_nchw.reshape(N, -1)
    h = relu(x @ cw.reshape(cw.shape[0], -1).T + cb)
    h = relu(h @ w1.T + b1)
    h = relu(h @ w2.T + b2)
    adv = relu(h @ wa1.T + ba1) @ wa2.T + ba2
    val = relu(h @ wv1.T + bv1) @ wv2.T + bv2
    return val + adv - jnp.mean(adv)


if __name__ == "__main__":
    key = jax.random.PRNGKey(0)
    k_param, k_x = jax.random.split(key)

    n_actions, frame_width, window_size, batch = 4, 2, 1, 2

    params = init_params(k_param, n_actions=n_actions,
                         frame_width=frame_width, window_size=window_size)
    x = jax.random.normal(k_x, (batch, window_size, 2, frame_width), jnp.float32)

    with jax.default_matmul_precision("float32"):
        ref = reference_forward(x, params)

    # f32 weights path
    out_f32 = jax.block_until_ready(dqn_forward(x, params, use_bf16=False))
    assert out_f32.shape == (batch, n_actions)
    assert bool(jnp.allclose(out_f32, ref, atol=1e-2, rtol=1e-2))

    # bf16 weights/activations path (f32 accumulation)
    out_bf16 = jax.block_until_ready(dqn_forward(x, params, use_bf16=True))
    assert out_bf16.shape == (batch, n_actions)
    rel = float(jnp.max(jnp.abs(out_bf16 - ref)) / (jnp.max(jnp.abs(ref)) + 1e-6))
    assert rel < 0.1

    print("KERNEL_OK")
</pallas_src>

<mosaic_0001>
module attributes {stable_mosaic.version = 11 : i64} {
  func.func @kernel(%arg0: i32, %arg1: memref<8x128xf32, #tpu.memory_space<vmem>>, %arg2: memref<64x8xf32, #tpu.memory_space<vmem>>, %arg3: memref<64x1xf32, #tpu.memory_space<vmem>>, %arg4: memref<64x64xf32, #tpu.memory_space<vmem>>, %arg5: memref<64x1xf32, #tpu.memory_space<vmem>>, %arg6: memref<64x64xf32, #tpu.memory_space<vmem>>, %arg7: memref<64x1xf32, #tpu.memory_space<vmem>>, %arg8: memref<128x64xf32, #tpu.memory_space<vmem>>, %arg9: memref<128x1xf32, #tpu.memory_space<vmem>>, %arg10: memref<8x128xf32, #tpu.memory_space<vmem>>, %arg11: memref<8x1xf32, #tpu.memory_space<vmem>>, %arg12: memref<4x128xf32, #tpu.memory_space<vmem>>, %arg13: memref<8x128xf32, #tpu.memory_space<vmem>>) attributes {dimension_semantics = [#tpu.dimension_semantics<parallel>], iteration_bounds = array<i64: 1>, scalar_prefetch = 0 : i64, scratch_operands = 0 : i64, tpu.core_type = #tpu.core_type<tc>, window_params = [{transform_indices = @transform_0, window_bounds = array<i64: 8, 128>}, {pipeline_mode = #tpu.pipeline_mode<synchronous>, transform_indices = @transform_1, window_bounds = array<i64: 64, 8>}, {pipeline_mode = #tpu.pipeline_mode<synchronous>, transform_indices = @transform_2, window_bounds = array<i64: 64, 1>}, {pipeline_mode = #tpu.pipeline_mode<synchronous>, transform_indices = @transform_3, window_bounds = array<i64: 64, 64>}, {pipeline_mode = #tpu.pipeline_mode<synchronous>, transform_indices = @transform_4, window_bounds = array<i64: 64, 1>}, {pipeline_mode = #tpu.pipeline_mode<synchronous>, transform_indices = @transform_5, window_bounds = array<i64: 64, 64>}, {pipeline_mode = #tpu.pipeline_mode<synchronous>, transform_indices = @transform_6, window_bounds = array<i64: 64, 1>}, {pipeline_mode = #tpu.pipeline_mode<synchronous>, transform_indices = @transform_7, window_bounds = array<i64: 128, 64>}, {pipeline_mode = #tpu.pipeline_mode<synchronous>, transform_indices = @transform_8, window_bounds = array<i64: 128, 1>}, {pipeline_mode = #tpu.pipeline_mode<synchronous>, transform_indices = @transform_9, window_bounds = array<i64: 8, 128>}, {pipeline_mode = #tpu.pipeline_mode<synchronous>, transform_indices = @transform_10, window_bounds = array<i64: 8, 1>}, {transform_indices = @transform_11, window_bounds = array<i64: 4, 128>}, {transform_indices = @transform_12, window_bounds = array<i64: 8, 128>}]} {
    %c0 = arith.constant 0 : index
    %c0_0 = arith.constant 0 : index
    %0 = vector.load %arg1[%c0, %c0_0] : memref<8x128xf32, #tpu.memory_space<vmem>>, vector<8x128xf32>
    %c0_1 = arith.constant 0 : index
    %c0_2 = arith.constant 0 : index
    %1 = vector.load %arg2[%c0_1, %c0_2] : memref<64x8xf32, #tpu.memory_space<vmem>>, vector<64x8xf32>
    %cst = arith.constant dense<0.000000e+00> : vector<64x128xf32>
    %2 = tpu.matmul %1, %0, %cst {dimension_numbers = #tpu.dot_dimension_numbers<[1], [0], [0], [1], [0, 0, 1, 1], [], []>} : vector<64x8xf32>, vector<8x128xf32>, vector<64x128xf32> -> vector<64x128xf32>
    %c0_3 = arith.constant 0 : index
    %c0_4 = arith.constant 0 : index
    %3 = vector.load %arg3[%c0_3, %c0_4] : memref<64x1xf32, #tpu.memory_space<vmem>>, vector<64x1xf32>
    %4 = vector.broadcast %3 : vector<64x1xf32> to vector<64x128xf32>
    %5 = arith.addf %2, %4 : vector<64x128xf32>
    %cst_5 = arith.constant 0.000000e+00 : f32
    %6 = vector.broadcast %cst_5 : f32 to vector<64x128xf32>
    %7 = arith.maximumf %5, %6 : vector<64x128xf32>
    %c0_6 = arith.constant 0 : index
    %c0_7 = arith.constant 0 : index
    %8 = vector.load %arg4[%c0_6, %c0_7] : memref<64x64xf32, #tpu.memory_space<vmem>>, vector<64x64xf32>
    %cst_8 = arith.constant dense<0.000000e+00> : vector<64x128xf32>
    %9 = tpu.matmul %8, %7, %cst_8 {dimension_numbers = #tpu.dot_dimension_numbers<[1], [0], [0], [1], [0, 0, 1, 1], [], []>} : vector<64x64xf32>, vector<64x128xf32>, vector<64x128xf32> -> vector<64x128xf32>
    %c0_9 = arith.constant 0 : index
    %c0_10 = arith.constant 0 : index
    %10 = vector.load %arg5[%c0_9, %c0_10] : memref<64x1xf32, #tpu.memory_space<vmem>>, vector<64x1xf32>
    %11 = vector.broadcast %10 : vector<64x1xf32> to vector<64x128xf32>
    %12 = arith.addf %9, %11 : vector<64x128xf32>
    %cst_11 = arith.constant 0.000000e+00 : f32
    %13 = vector.broadcast %cst_11 : f32 to vector<64x128xf32>
    %14 = arith.maximumf %12, %13 : vector<64x128xf32>
    %c0_12 = arith.constant 0 : index
    %c0_13 = arith.constant 0 : index
    %15 = vector.load %arg6[%c0_12, %c0_13] : memref<64x64xf32, #tpu.memory_space<vmem>>, vector<64x64xf32>
    %cst_14 = arith.constant dense<0.000000e+00> : vector<64x128xf32>
    %16 = tpu.matmul %15, %14, %cst_14 {dimension_numbers = #tpu.dot_dimension_numbers<[1], [0], [0], [1], [0, 0, 1, 1], [], []>} : vector<64x64xf32>, vector<64x128xf32>, vector<64x128xf32> -> vector<64x128xf32>
    %c0_15 = arith.constant 0 : index
    %c0_16 = arith.constant 0 : index
    %17 = vector.load %arg7[%c0_15, %c0_16] : memref<64x1xf32, #tpu.memory_space<vmem>>, vector<64x1xf32>
    %18 = vector.broadcast %17 : vector<64x1xf32> to vector<64x128xf32>
    %19 = arith.addf %16, %18 : vector<64x128xf32>
    %cst_17 = arith.constant 0.000000e+00 : f32
    %20 = vector.broadcast %cst_17 : f32 to vector<64x128xf32>
    %21 = arith.maximumf %19, %20 : vector<64x128xf32>
    %c0_18 = arith.constant 0 : index
    %c0_19 = arith.constant 0 : index
    %22 = vector.load %arg8[%c0_18, %c0_19] : memref<128x64xf32, #tpu.memory_space<vmem>>, vector<128x64xf32>
    %cst_20 = arith.constant dense<0.000000e+00> : vector<128x128xf32>
    %23 = tpu.matmul %22, %21, %cst_20 {dimension_numbers = #tpu.dot_dimension_numbers<[1], [0], [0], [1], [0, 0, 1, 1], [], []>} : vector<128x64xf32>, vector<64x128xf32>, vector<128x128xf32> -> vector<128x128xf32>
    %c0_21 = arith.constant 0 : index
    %c0_22 = arith.constant 0 : index
    %24 = vector.load %arg9[%c0_21, %c0_22] : memref<128x1xf32, #tpu.memory_space<vmem>>, vector<128x1xf32>
    %25 = vector.broadcast %24 : vector<128x1xf32> to vector<128x128xf32>
    %26 = arith.addf %23, %25 : vector<128x128xf32>
    %cst_23 = arith.constant 0.000000e+00 : f32
    %27 = vector.broadcast %cst_23 : f32 to vector<128x128xf32>
    %28 = arith.maximumf %26, %27 : vector<128x128xf32>
    %c0_24 = arith.constant 0 : index
    %c0_25 = arith.constant 0 : index
    %29 = vector.load %arg10[%c0_24, %c0_25] : memref<8x128xf32, #tpu.memory_space<vmem>>, vector<8x128xf32>
    %cst_26 = arith.constant dense<0.000000e+00> : vector<8x128xf32>
    %30 = tpu.matmul %29, %28, %cst_26 {dimension_numbers = #tpu.dot_dimension_numbers<[1], [0], [0], [1], [0, 0, 1, 1], [], []>} : vector<8x128xf32>, vector<128x128xf32>, vector<8x128xf32> -> vector<8x128xf32>
    %c0_27 = arith.constant 0 : index
    %c0_28 = arith.constant 0 : index
    %31 = vector.load %arg11[%c0_27, %c0_28] : memref<8x1xf32, #tpu.memory_space<vmem>>, vector<8x1xf32>
    %32 = vector.broadcast %31 : vector<8x1xf32> to vector<8x128xf32>
    %33 = arith.addf %30, %32 : vector<8x128xf32>
    %34 = vector.extract_strided_slice %33 {offsets = [0, 0], sizes = [4, 128], strides = [1, 1]} : vector<8x128xf32> to vector<4x128xf32>
    %35 = vector.extract_strided_slice %33 {offsets = [4, 0], sizes = [1, 128], strides = [1, 1]} : vector<8x128xf32> to vector<1x128xf32>
    %36 = vector.broadcast %35 : vector<1x128xf32> to vector<4x128xf32>
    %37 = arith.addf %34, %36 : vector<4x128xf32>
    %c0_29 = arith.constant 0 : index
    %c0_30 = arith.constant 0 : index
    %38 = vector.load %arg12[%c0_29, %c0_30] : memref<4x128xf32, #tpu.memory_space<vmem>>, vector<4x128xf32>
    tpu.vector_store %arg12[%c0_29, %c0_30], %37 {strides = array<i32>} : memref<4x128xf32, #tpu.memory_space<vmem>>, vector<4x128xf32>,
    %39 = tpu.iota {dimensions = array<i32: 1>} : vector<4x128xi32>
    %c128_i32 = arith.constant 128 : i32
    %40 = arith.muli %arg0, %c128_i32 : i32
    %41 = vector.broadcast %40 : i32 to vector<4x128xi32>
    %42 = arith.addi %39, %41 : vector<4x128xi32>
    %c2_i32 = arith.constant 2 : i32
    %43 = vector.broadcast %c2_i32 : i32 to vector<4x128xi32>
    %44 = arith.cmpi slt, %42, %43 : vector<4x128xi32>
    %cst_31 = arith.constant 0.000000e+00 : f32
    %45 = vector.broadcast %cst_31 : f32 to vector<4x128xf32>
    %46 = arith.select %44, %34, %45 : vector<4x128xi1>, vector<4x128xf32>
    %47 = vector.shape_cast %46 : vector<4x128xf32> to vector<1x4x128xf32>
    %cst_32 = arith.constant dense<0.000000e+00> : vector<1xf32>
    %48 = vector.multi_reduction <add>, %47, %cst_32 [1, 2] : vector<1x4x128xf32> to vector<1xf32>
    %49 = vector.shape_cast %48 : vector<1xf32> to vector<1x1x1xf32>
    %50 = vector.extract %49[0, 0, 0] : f32 from vector<1x1x1xf32>
    %cst_33 = arith.constant 0.000000e+00 : f32
    %51 = vector.broadcast %cst_33 : f32 to vector<8x128xf32>
    %52 = vector.broadcast %50 : f32 to vector<8x128xf32>
    %53 = arith.addf %51, %52 : vector<8x128xf32>
    %c0_34 = arith.constant 0 : index
    %c0_35 = arith.constant 0 : index
    %54 = vector.load %arg13[%c0_34, %c0_35] : memref<8x128xf32, #tpu.memory_space<vmem>>, vector<8x128xf32>
    tpu.vector_store %arg13[%c0_34, %c0_35], %53 {strides = array<i32>} : memref<8x128xf32, #tpu.memory_space<vmem>>, vector<8x128xf32>,
    return
  }
  func.func @transform_0(%arg0: i32) -> (i32, i32) {
    %c0_i32 = arith.constant 0 : i32
    %c0_i32_0 = arith.constant 0 : i32
    return %c0_i32, %arg0 : i32, i32
  }
  func.func @transform_1(%arg0: i32) -> (i32, i32) {
    %c0_i32 = arith.constant 0 : i32
    %c0_i32_0 = arith.constant 0 : i32
    %c0_i32_1 = arith.constant 0 : i32
    return %c0_i32, %c0_i32_0 : i32, i32
  }
  func.func @transform_2(%arg0: i32) -> (i32, i32) {
    %c0_i32 = arith.constant 0 : i32
    %c0_i32_0 = arith.constant 0 : i32
    %c0_i32_1 = arith.constant 0 : i32
    return %c0_i32, %c0_i32_0 : i32, i32
  }
  func.func @transform_3(%arg0: i32) -> (i32, i32) {
    %c0_i32 = arith.constant 0 : i32
    %c0_i32_0 = arith.constant 0 : i32
    %c0_i32_1 = arith.constant 0 : i32
    return %c0_i32, %c0_i32_0 : i32, i32
  }
  func.func @transform_4(%arg0: i32) -> (i32, i32) {
    %c0_i32 = arith.constant 0 : i32
    %c0_i32_0 = arith.constant 0 : i32
    %c0_i32_1 = arith.constant 0 : i32
    return %c0_i32, %c0_i32_0 : i32, i32
  }
  func.func @transform_5(%arg0: i32) -> (i32, i32) {
    %c0_i32 = arith.constant 0 : i32
    %c0_i32_0 = arith.constant 0 : i32
    %c0_i32_1 = arith.constant 0 : i32
    return %c0_i32, %c0_i32_0 : i32, i32
  }
  func.func @transform_6(%arg0: i32) -> (i32, i32) {
    %c0_i32 = arith.constant 0 : i32
    %c0_i32_0 = arith.constant 0 : i32
    %c0_i32_1 = arith.constant 0 : i32
    return %c0_i32, %c0_i32_0 : i32, i32
  }
  func.func @transform_7(%arg0: i32) -> (i32, i32) {
    %c0_i32 = arith.constant 0 : i32
    %c0_i32_0 = arith.constant 0 : i32
    %c0_i32_1 = arith.constant 0 : i32
    return %c0_i32, %c0_i32_0 : i32, i32
  }
  func.func @transform_8(%arg0: i32) -> (i32, i32) {
    %c0_i32 = arith.constant 0 : i32
    %c0_i32_0 = arith.constant 0 : i32
    %c0_i32_1 = arith.constant 0 : i32
    return %c0_i32, %c0_i32_0 : i32, i32
  }
  func.func @transform_9(%arg0: i32) -> (i32, i32) {
    %c0_i32 = arith.constant 0 : i32
    %c0_i32_0 = arith.constant 0 : i32
    %c0_i32_1 = arith.constant 0 : i32
    return %c0_i32, %c0_i32_0 : i32, i32
  }
  func.func @transform_10(%arg0: i32) -> (i32, i32) {
    %c0_i32 = arith.constant 0 : i32
    %c0_i32_0 = arith.constant 0 : i32
    %c0_i32_1 = arith.constant 0 : i32
    return %c0_i32, %c0_i32_0 : i32, i32
  }
  func.func @transform_11(%arg0: i32) -> (i32, i32) {
    %c0_i32 = arith.constant 0 : i32
    %c0_i32_0 = arith.constant 0 : i32
    return %c0_i32, %arg0 : i32, i32
  }
  func.func @transform_12(%arg0: i32) -> (i32, i32) {
    %c0_i32 = arith.constant 0 : i32
    %c0_i32_0 = arith.constant 0 : i32
    return %c0_i32, %arg0 : i32, i32
  }
}

</mosaic_0001>

<bundles_post_ra>
// kernel: tpu_custom_call.1
= control target key start
LH: loop header
LB: loop body
LE: loop exit
PB: predicated region body
PF: predicated region fallthrough
CT: control target
= control target key end

     0   :  { %18 = vsyncpa [#allocation3], 0  ;;  %vm99_vm0 = vcmask 64512   ;;  %v1474_v5 = vmov 0   ;;  %s1866_s0 = inlined_call_operand.vmem [shape: f32[8,128], index: 0, kind: input, shape index: {}]   ;;  %s1867_s1 = inlined_call_operand.vmem [shape: f32[64,8], index: 1, kind: input, shape index: {}]   ;;  %s1868_s2 = inlined_call_operand.vmem [shape: f32[64,1], index: 2, kind: input, shape index: {}]   ;;  %s1869_s3 = inlined_call_operand.vmem [shape: f32[64,64], index: 3, kind: input, shape index: {}]   ;;  %s1870_s4 = inlined_call_operand.vmem [shape: f32[64,1], index: 4, kind: input, shape index: {}]   ;;  %s1871_s5 = inlined_call_operand.vmem [shape: f32[64,64], index: 5, kind: input, shape index: {}]   ;;  %s1872_s6 = inlined_call_operand.vmem [shape: f32[64,1], index: 6, kind: input, shape index: {}]   ;;  %s1873_s7 = inlined_call_operand.vmem [shape: f32[128,64], index: 7, kind: input, shape index: {}]   ;;  %s1874_s8 = inlined_call_operand.vmem [shape: f32[128,1], index: 8, kind: input, shape index: {}]   ;;  %s1875_s9 = inlined_call_operand.vmem [shape: f32[8,128], index: 9, kind: input, shape index: {}]   ;;  %s1876_s10 = inlined_call_operand.vmem [shape: f32[8,1], index: 10, kind: input, shape index: {}]   ;;  %s1877_s11 = inlined_call_operand.hbm [shape: f32[4,128], index: 11, kind: output, shape index: {0}]   ;;  %s1878_s12 = inlined_call_operand.hbm [shape: f32[8,128], index: 12, kind: output, shape index: {1}]  }
   0x1   :  { %v42_v0 = vld [vmem:[%s1866_s0] sm:$0xff]  ;;  %v44_v2 = vld [vmem:[%s1867_s1 + $0x8] sm:$0xff]  ;;  %v45_v4 = vld [vmem:[%s1867_s1 + $0x10] sm:$0xff]  ;;  %1424 = vset.pattern.permute.xlu0 %v1474_v5  ;;  %1425 = vset.pattern.permute.xlu1 %v1474_v5 }
   0x2   :  { %v43_v1 = vld [vmem:[%s1867_s1] sm:$0xff]  ;;  %1199 = vmatprep.subr.mxu0 %v42_v0  ;;  %v53_v6 = vld [vmem:[%s1868_s2 + $0x10] sm:$0xff]  ;;  %v46_v7 = vld [vmem:[%s1867_s1 + $0x18] sm:$0xff] }
   0x3   :  { %1201 = vmatprep.mubr.msk.f32.mxu0 %vm99_vm0, %v43_v1  ;;  %v51_v3 = vld [vmem:[%s1868_s2] sm:$0xff]  ;;  %1200 = vmatpush3.msra.mxu0 %v42_v0  ;;  %v52_v8 = vld [vmem:[%s1868_s2 + $0x8] sm:$0xff]  ;;  %v54_v10 = vld [vmem:[%s1868_s2 + $0x18] sm:$0xff] }
   0x4   :  { %1202 = vmatmul.mubr.msk.f32.vlgmr.msra.gmra.mrb[0].mxu0 %vm99_vm0, %v44_v2  ;;  %61 = vperm.xlu0 %1424, %v51_v3   ;;  %v47_v9 = vld [vmem:[%s1867_s1 + $0x20] sm:$0xff]  ;;  %v48_v11 = vld [vmem:[%s1867_s1 + $0x28] sm:$0xff]  ;;  %v49_v13 = vld [vmem:[%s1867_s1 + $0x30] sm:$0xff] }
   0x5   :  { %1204 = vmatprep.mubr.msk.f32.mxu0 %vm99_vm0, %v45_v4  ;;  %71 = vperm.xlu1 %1425, %v53_v6   ;;  %v55_v12 = vld [vmem:[%s1868_s2 + $0x20] sm:$0xff]  ;;  %v56_v14 = vld [vmem:[%s1868_s2 + $0x28] sm:$0xff]  ;;  %v50_v15 = vld [vmem:[%s1867_s1 + $0x38] sm:$0xff] }
   0x6   :  { %v57_v16 = vld [vmem:[%s1868_s2 + $0x30] sm:$0xff]  ;;  %v58_v17 = vld [vmem:[%s1868_s2 + $0x38] sm:$0xff]  ;;  %v245_v18 = vld [vmem:[%s1870_s4] sm:$0xff] }
   0x8   :  { %1205 = vmatmul.mubr.msk.f32.gmra.mrb[2].mxu0 %vm99_vm0, %v46_v7  ;;  %66 = vperm.xlu0 %1424, %v52_v8  }
   0x9   :  { %1207 = vmatprep.mubr.msk.f32.mxu0 %vm99_vm0, %v47_v9  ;;  %76 = vperm.xlu1 %1425, %v54_v10  }
   0xc   :  { %1208 = vmatmul.mubr.msk.f32.gmra.mrb[4].mxu0 %vm99_vm0, %v48_v11  ;;  %81 = vperm.xlu0 %1424, %v55_v12  }
   0xd   :  { %1210 = vmatprep.mubr.msk.f32.mxu0 %vm99_vm0, %v49_v13  ;;  %86 = vperm.xlu1 %1425, %v56_v14  }
  0x10   :  { %1211 = vmatmul.mubr.msk.f32.gmra.mrb[6].mxu0 %vm99_vm0, %v50_v15  ;;  %91 = vperm.xlu0 %1424, %v57_v16  }
  0x11   :  { %19 = vsyncpa [#allocation5], 0  ;;  %96 = vperm.xlu1 %1425, %v58_v17   ;;  %v246_v19 = vld [vmem:[%s1870_s4 + $0x8] sm:$0xff]  ;;  %v247_v20 = vld [vmem:[%s1870_s4 + $0x10] sm:$0xff]  ;;  %vm293_vm1 = vcmask 523264   ;;  %vm1476_vm2 = vmmov 0  }
  0x12   :  { %v248_v21 = vld [vmem:[%s1870_s4 + $0x18] sm:$0xff]  ;;  %v249_v22 = vld [vmem:[%s1870_s4 + $0x20] sm:$0xff]  ;;  %v250_v23 = vld [vmem:[%s1870_s4 + $0x28] sm:$0xff]  ;;  %vm1035_vm4 = vcmask 1043456   ;;  %s1478_s22 = smov [#allocation2]  }
  0x13   :  { %v251_v24 = vld [vmem:[%s1870_s4 + $0x30] sm:$0xff]  ;;  %v252_v25 = vld [vmem:[%s1870_s4 + $0x38] sm:$0xff]  ;;  %v439_v26 = vld [vmem:[%s1872_s6] sm:$0xff]  ;;  %s1055_s23 = sshll.u32 %s1478_s22, 4  ;;  %s1056_s23 = int_to_ptr.vmem [resolvable:$true] %s1055_s23 }
  0x14   :  { %255 = vperm.xlu0 %1424, %v245_v18   ;;  %v440_v27 = vld [vmem:[%s1872_s6 + $0x8] sm:$0xff]  ;;  %v441_v28 = vld [vmem:[%s1872_s6 + $0x10] sm:$0xff]  ;;  %v442_v29 = vld [vmem:[%s1872_s6 + $0x18] sm:$0xff]  ;;  %p1431_p1 = scmp.lt.s32.totalorder %s1056_s23, %s1056_s23 }
  0x15   :  { %260 = vperm.xlu1 %1425, %v246_v19   ;;  %v443_v30 = vld [vmem:[%s1872_s6 + $0x20] sm:$0xff]  ;;  %v444_v31 = vld [vmem:[%s1872_s6 + $0x28] sm:$0xff]  ;;  %v445_v32 = vld [vmem:[%s1872_s6 + $0x30] sm:$0xff] }
  0x16   :  { %v446_v33 = vld [vmem:[%s1872_s6 + $0x38] sm:$0xff]  ;;  %v640_v34 = vld [vmem:[%s1874_s8] sm:$0xff]  ;;  %v641_v35 = vld [vmem:[%s1874_s8 + $0x8] sm:$0xff] }
  0x17   :  { %v642_v36 = vld [vmem:[%s1874_s8 + $0x10] sm:$0xff]  ;;  %v643_v37 = vld [vmem:[%s1874_s8 + $0x18] sm:$0xff]  ;;  %v644_v38 = vld [vmem:[%s1874_s8 + $0x20] sm:$0xff] }
  0x18   :  { %265 = vperm.xlu0 %1424, %v247_v20   ;;  %v645_v39 = vld [vmem:[%s1874_s8 + $0x28] sm:$0xff]  ;;  %v646_v40 = vld [vmem:[%s1874_s8 + $0x30] sm:$0xff]  ;;  %v647_v41 = vld [vmem:[%s1874_s8 + $0x38] sm:$0xff] }
  0x19   :  { %270 = vperm.xlu1 %1425, %v248_v21   ;;  %v648_v42 = vld [vmem:[%s1874_s8 + $0x40] sm:$0xff]  ;;  %v649_v43 = vld [vmem:[%s1874_s8 + $0x48] sm:$0xff]  ;;  %v650_v44 = vld [vmem:[%s1874_s8 + $0x50] sm:$0xff] }
  0x1a   :  { %v651_v45 = vld [vmem:[%s1874_s8 + $0x58] sm:$0xff]  ;;  %v652_v46 = vld [vmem:[%s1874_s8 + $0x60] sm:$0xff]  ;;  %v653_v47 = vld [vmem:[%s1874_s8 + $0x68] sm:$0xff] }
  0x1b   :  { %v654_v48 = vld [vmem:[%s1874_s8 + $0x70] sm:$0xff]  ;;  %v655_v49 = vld [vmem:[%s1874_s8 + $0x78] sm:$0xff]  ;;  %v946_v50 = vld [vmem:[%s1876_s10] sm:$0xff] }
  0x1c   :  { %275 = vperm.xlu0 %1424, %v249_v22   ;;  %v237_v51 = vld [vmem:[%s1869_s3] sm:$0xff] }
  0x1d   :  { %280 = vperm.xlu1 %1425, %v250_v23   ;;  %1229 = vmatprep.mubr.msk.f32.mxu1 %vm293_vm1, %v237_v51 }
  0x20   :  { %285 = vperm.xlu0 %1424, %v251_v24   ;;  %v238_v24 = vld [vmem:[%s1869_s3 + $0x8] sm:$0xff] }
  0x21   :  { %290 = vperm.xlu1 %1425, %v252_v25   ;;  %v239_v25 = vld [vmem:[%s1869_s3 + $0x10] sm:$0xff] }
  0x24   :  { %449 = vperm.xlu0 %1424, %v439_v26   ;;  %v240_v26 = vld [vmem:[%s1869_s3 + $0x18] sm:$0xff] }
  0x25   :  { %454 = vperm.xlu1 %1425, %v440_v27   ;;  %v241_v27 = vld [vmem:[%s1869_s3 + $0x20] sm:$0xff] }
  0x28   :  { %459 = vperm.xlu0 %1424, %v441_v28   ;;  %v242_v28 = vld [vmem:[%s1869_s3 + $0x28] sm:$0xff] }
  0x29   :  { %464 = vperm.xlu1 %1425, %v442_v29   ;;  %v243_v29 = vld [vmem:[%s1869_s3 + $0x30] sm:$0xff] }
  0x2c   :  { %469 = vperm.xlu0 %1424, %v443_v30   ;;  %v244_v30 = vld [vmem:[%s1869_s3 + $0x38] sm:$0xff] }
  0x2d   :  { %474 = vperm.xlu1 %1425, %v444_v31   ;;  %v431_v31 = vld [vmem:[%s1871_s5] sm:$0xff] }
  0x2e   :  { %1257 = vmatprep.mubr.msk.f32.mxu0 %vm293_vm1, %v431_v31 }
  0x30   :  { %479 = vperm.xlu0 %1424, %v445_v32  }
  0x31   :  { %484 = vperm.xlu1 %1425, %v446_v33  }
  0x34   :  { %658 = vperm.xlu0 %1424, %v640_v34  }
  0x35   :  { %663 = vperm.xlu1 %1425, %v641_v35  }
  0x38   :  { %668 = vperm.xlu0 %1424, %v642_v36  }
  0x39   :  { %673 = vperm.xlu1 %1425, %v643_v37  }
  0x3c   :  { %678 = vperm.xlu0 %1424, %v644_v38  }
  0x3d   :  { %683 = vperm.xlu1 %1425, %v645_v39  }
  0x40   :  { %688 = vperm.xlu0 %1424, %v646_v40  }
  0x41   :  { %693 = vperm.xlu1 %1425, %v647_v41  }
  0x44   :  { %698 = vperm.xlu0 %1424, %v648_v42  }
  0x45   :  { %703 = vperm.xlu1 %1425, %v649_v43  }
  0x48   :  { %708 = vperm.xlu0 %1424, %v650_v44  }
  0x49   :  { %713 = vperm.xlu1 %1425, %v651_v45  }
  0x4c   :  { %718 = vperm.xlu0 %1424, %v652_v46  }
  0x4d   :  { %723 = vperm.xlu1 %1425, %v653_v47  }
  0x50   :  { %728 = vperm.xlu0 %1424, %v654_v48  }
  0x51   :  { %733 = vperm.xlu1 %1425, %v655_v49  }
  0x54   :  { %949 = vperm.xlu0 %1424, %v946_v50  }
  0x83   :  { %v62_v52 = vpop.permute.xlu0 %61 }
  0x84   :  { %v72_v53 = vpop.permute.xlu1 %71 }
  0x87   :  { %v67_v54 = vpop.permute.xlu0 %66 }
  0x88   :  { %v77_v55 = vpop.permute.xlu1 %76 }
  0x8b   :  { %v82_v4 = vpop.permute.xlu0 %81 }
  0x8c   :  { %v87_v1 = vpop.permute.xlu1 %86 }
  0x8f   :  { %v92_v16 = vpop.permute.xlu0 %91 }
  0x90   :  { %v97_v13 = vpop.permute.xlu1 %96 }
  0x93   :  { %v256_v33 = vpop.permute.xlu0 %255 }
  0x94   :  { %v261_v32 = vpop.permute.xlu1 %260 }
  0x97   :  { %v266_v36 = vpop.permute.xlu0 %265 }
  0x98   :  { %v271_v34 = vpop.permute.xlu1 %270 }
  0x9b   :  { %v276_v48 = vpop.permute.xlu0 %275 }
  0x9c   :  { %v281_v45 = vpop.permute.xlu1 %280 }
  0xd7   :  { %v1203_v56 = vpop.f32.mrb[0].mxu0 }
  0xd8   :  { %v196_v57 = vadd.f32 %v1203_v56, %v67_v54  ;;  %v190_v58 = vpop.f32.mrb[1].mxu0 }
  0xd9   :  { %v191_v59 = vadd.f32 %v190_v58, %v62_v52 }
  0xda   :  { %v230_v60 = vmax.f32 %v196_v57, 0.0  ;;  %v291_v57 = vpop.permute.xlu1 %290 }
  0xdb   :  { %v229_v61 = vmax.f32 %v191_v59, 0.0  ;;  %v1206_v62 = vpop.f32.mrb[2].mxu0 }
  0xdc   :  { %v206_v63 = vadd.f32 %v1206_v62, %v77_v55  ;;  %v200_v0 = vpop.f32.mrb[3].mxu0 }
  0xdd   :  { %v201_v2 = vadd.f32 %v200_v0, %v72_v53  ;;  %v1344_v3 = vpack.c.bf16 %v230_v60, %v229_v61  ;;  %v286_v60 = vpop.permute.xlu0 %285 }
  0xde   :  { %v232_v5 = vmax.f32 %v206_v63, 0.0 }
  0xdf   :  { %v231_v6 = vmax.f32 %v201_v2, 0.0  ;;  %v1209_v7 = vpop.f32.mrb[4].mxu0  ;;  %1345 = vmatprep.subr.bf16.mxu1 %v1344_v3 }
  0xe0   :  { %v216_v8 = vadd.f32 %v1209_v7, %v87_v1  ;;  %v210_v9 = vpop.f32.mrb[5].mxu0  ;;  %1347 = vmatpush3.bf16.msra.mxu1 %v1344_v3  ;;  %v435_v7 = vld [vmem:[%s1871_s5 + $0x20] sm:$0xff] }
  0xe1   :  { %v1348_v10 = vpack.c.bf16 %v232_v5, %v231_v6  ;;  %v211_v11 = vadd.f32 %v210_v9, %v82_v4  ;;  %v432_v4 = vld [vmem:[%s1871_s5 + $0x8] sm:$0xff]  ;;  %v433_v5 = vld [vmem:[%s1871_s5 + $0x10] sm:$0xff]  ;;  %v434_v6 = vld [vmem:[%s1871_s5 + $0x18] sm:$0xff] }
  0xe2   :  { %v234_v12 = vmax.f32 %v216_v8, 0.0  ;;  %v436_v8 = vld [vmem:[%s1871_s5 + $0x28] sm:$0xff]  ;;  %v437_v9 = vld [vmem:[%s1871_s5 + $0x30] sm:$0xff] }
  0xe3   :  { %v233_v14 = vmax.f32 %v211_v11, 0.0  ;;  %v1212_v15 = vpop.f32.mrb[6].mxu0  ;;  %1349 = vmatprep.subr.bf16.mxu1 %v1348_v10  ;;  %v624_v11 = vld [vmem:[%s1873_s7] sm:$0xff] }
  0xe4   :  { %v226_v17 = vadd.f32 %v1212_v15, %v97_v13  ;;  %v220_v18 = vpop.f32.mrb[7].mxu0  ;;  %1351 = vmatpush3.bf16.msra.mxu1 %v1348_v10  ;;  %v438_v10 = vld [vmem:[%s1871_s5 + $0x38] sm:$0xff]  ;;  %v450_v13 = vpop.permute.xlu0 %449 }
  0xe5   :  { %v1352_v19 = vpack.c.bf16 %v234_v12, %v233_v14  ;;  %v221_v20 = vadd.f32 %v220_v18, %v92_v16  ;;  %v455_v12 = vpop.permute.xlu1 %454 }
  0xe6   :  { %v236_v21 = vmax.f32 %v226_v17, 0.0 }
  0xe7   :  { %v235_v22 = vmax.f32 %v221_v20, 0.0  ;;  %1353 = vmatprep.subr.bf16.mxu1 %v1352_v19 }
  0xe8   :  { %1355 = vmatpush3.bf16.msra.mxu1 %v1352_v19  ;;  %v460_v16 = vpop.permute.xlu0 %459 }
  0xe9   :  { %v1356_v23 = vpack.c.bf16 %v236_v21, %v235_v22  ;;  %v465_v14 = vpop.permute.xlu1 %464 }
  0xeb   :  { %1357 = vmatprep.subr.bf16.mxu1 %v1356_v23 }
  0xec   :  { %1359 = vmatpush3.bf16.msra.mxu1 %v1356_v23 }
  0xef   :  { %1230 = vmatmul.mubr.msk.f32.vlgmr.msra.gmra.mrb[0].mxu1 %vm293_vm1, %v238_v24 }
  0xf0   :  { %1232 = vmatprep.mubr.msk.f32.mxu1 %vm293_vm1, %v239_v25  ;;  %v475_v25 = vpop.permute.xlu1 %474 }
  0xf3   :  { %1233 = vmatmul.mubr.msk.f32.gmra.mrb[2].mxu1 %vm293_vm1, %v240_v26 }
  0xf4   :  { %1235 = vmatprep.mubr.msk.f32.mxu1 %vm293_vm1, %v241_v27 }
  0xf7   :  { %1236 = vmatmul.mubr.msk.f32.gmra.mrb[4].mxu1 %vm293_vm1, %v242_v28  ;;  %v470_v28 = vpop.permute.xlu0 %469 }
  0xf8   :  { %1238 = vmatprep.mubr.msk.f32.mxu1 %vm293_vm1, %v243_v29 }
  0xfb   :  { %1239 = vmatmul.mubr.msk.f32.gmra.mrb[6].mxu1 %vm293_vm1, %v244_v30 }
  0xfc   :  { %1285 = vmatprep.mubr.msk.f32.mxu1 %vm293_vm1, %v624_v11 }
 0x1c2   :  { %v1231_v35 = vpop.f32.mrb[0].mxu1 }
 0x1c3   :  { %v390_v37 = vadd.f32 %v1231_v35, %v261_v32  ;;  %v384_v38 = vpop.f32.mrb[1].mxu1 }
 0x1c4   :  { %v385_v39 = vadd.f32 %v384_v38, %v256_v33 }
 0x1c5   :  { %v424_v40 = vmax.f32 %v390_v37, 0.0  ;;  %v485_v37 = vpop.permute.xlu1 %484 }
 0x1c6   :  { %v423_v41 = vmax.f32 %v385_v39, 0.0  ;;  %v1234_v42 = vpop.f32.mrb[2].mxu1 }
 0x1c7   :  { %v400_v43 = vadd.f32 %v1234_v42, %v271_v34  ;;  %v394_v44 = vpop.f32.mrb[3].mxu1 }
 0x1c8   :  { %v1360_v46 = vpack.c.bf16 %v424_v40, %v423_v41  ;;  %v395_v47 = vadd.f32 %v394_v44, %v266_v36  ;;  %v480_v40 = vpop.permute.xlu0 %479 }
 0x1c9   :  { %v426_v49 = vmax.f32 %v400_v43, 0.0 }
 0x1ca   :  { %v425_v50 = vmax.f32 %v395_v47, 0.0  ;;  %v1237_v51 = vpop.f32.mrb[4].mxu1  ;;  %1361 = vmatprep.subr.bf16.mxu0 %v1360_v46 }
 0x1cb   :  { %v410_v52 = vadd.f32 %v1237_v51, %v281_v45  ;;  %v404_v53 = vpop.f32.mrb[5].mxu1  ;;  %1363 = vmatpush3.bf16.msra.mxu0 %v1360_v46  ;;  %v628_v51 = vld [vmem:[%s1873_s7 + $0x20] sm:$0xff] }
 0x1cc   :  { %v1364_v54 = vpack.c.bf16 %v426_v49, %v425_v50  ;;  %v405_v55 = vadd.f32 %v404_v53, %v276_v48  ;;  %v625_v48 = vld [vmem:[%s1873_s7 + $0x8] sm:$0xff]  ;;  %v626_v49 = vld [vmem:[%s1873_s7 + $0x10] sm:$0xff]  ;;  %v627_v50 = vld [vmem:[%s1873_s7 + $0x18] sm:$0xff] }
 0x1cd   :  { %v428_v56 = vmax.f32 %v410_v52, 0.0  ;;  %v629_v52 = vld [vmem:[%s1873_s7 + $0x28] sm:$0xff]  ;;  %v630_v53 = vld [vmem:[%s1873_s7 + $0x30] sm:$0xff] }
 0x1ce   :  { %v427_v58 = vmax.f32 %v405_v55, 0.0  ;;  %v1240_v59 = vpop.f32.mrb[6].mxu1  ;;  %1365 = vmatprep.subr.bf16.mxu0 %v1364_v54  ;;  %v632_v55 = vld [vmem:[%s1873_s7 + $0x40] sm:$0xff] }
 0x1cf   :  { %v420_v61 = vadd.f32 %v1240_v59, %v291_v57  ;;  %v414_v62 = vpop.f32.mrb[7].mxu1  ;;  %1367 = vmatpush3.bf16.msra.mxu0 %v1364_v54  ;;  %v631_v54 = vld [vmem:[%s1873_s7 + $0x38] sm:$0xff]  ;;  %v634_v57 = vld [vmem:[%s1873_s7 + $0x50] sm:$0xff]  ;;  %v636_v59 = vld [vmem:[%s1873_s7 + $0x60] sm:$0xff] }
 0x1d0   :  { %v1368_v63 = vpack.c.bf16 %v428_v56, %v427_v58  ;;  %v415_v0 = vadd.f32 %v414_v62, %v286_v60  ;;  %v633_v56 = vld [vmem:[%s1873_s7 + $0x48] sm:$0xff]  ;;  %v635_v58 = vld [vmem:[%s1873_s7 + $0x58] sm:$0xff] }
 0x1d1   :  { %v430_v1 = vmax.f32 %v420_v61, 0.0  ;;  %v637_v60 = vld [vmem:[%s1873_s7 + $0x68] sm:$0xff]  ;;  %v638_v61 = vld [vmem:[%s1873_s7 + $0x70] sm:$0xff]  ;;  %v639_v62 = vld [vmem:[%s1873_s7 + $0x78] sm:$0xff] }
 0x1d2   :  { %v429_v2 = vmax.f32 %v415_v0, 0.0  ;;  %1369 = vmatprep.subr.bf16.mxu0 %v1368_v63  ;;  %v1477_v0 = vmov 0.0  }
 0x1d3   :  { %1371 = vmatpush3.bf16.msra.mxu0 %v1368_v63  ;;  %v1475_v63 = vmov 0.0|0.0  }
 0x1d4   :  { %v1372_v3 = vpack.c.bf16 %v430_v1, %v429_v2  ;;  %v664_v1 = vpop.permute.xlu1 %663  ;;  %v659_v2 = vpop.permute.xlu0 %658 }
 0x1d6   :  { %1373 = vmatprep.subr.bf16.mxu0 %v1372_v3 }
 0x1d7   :  { %1375 = vmatpush3.bf16.msra.mxu0 %v1372_v3 }
 0x1d8   :  { %1392 = vmatprep.subr.bf16.mxu0 %v1475_v63  ;;  %v674_v3 = vpop.permute.xlu1 %673 }
 0x1da   :  { %1258 = vmatmul.mubr.msk.f32.vlgmr.msra.gmra.mrb[8].mxu0 %vm293_vm1, %v432_v4  ;;  %v669_v4 = vpop.permute.xlu0 %668 }
 0x1db   :  { %1260 = vmatprep.mubr.msk.f32.mxu0 %vm293_vm1, %v433_v5 }
 0x1dc   :  { %v684_v5 = vpop.permute.xlu1 %683 }
 0x1de   :  { %1261 = vmatmul.mubr.msk.f32.gmra.mrb[10].mxu0 %vm293_vm1, %v434_v6  ;;  %v679_v6 = vpop.permute.xlu0 %678 }
 0x1df   :  { %1263 = vmatprep.mubr.msk.f32.mxu0 %vm293_vm1, %v435_v7 }
 0x1e2   :  { %1264 = vmatmul.mubr.msk.f32.gmra.mrb[12].mxu0 %vm293_vm1, %v436_v8 }
 0x1e3   :  { %1266 = vmatprep.mubr.msk.f32.mxu0 %vm293_vm1, %v437_v9 }
 0x1e6   :  { %1267 = vmatmul.mubr.msk.f32.gmra.mrb[14].mxu0 %vm293_vm1, %v438_v10 }
 0x1e7   :  { %1341 = vmatprep.mubr.msk.f32.mxu0 %vm1476_vm2, %v1477_v0 }
 0x2ad   :  { %v1259_v15 = vpop.f32.mrb[8].mxu0 }
 0x2ae   :  { %v583_v17 = vadd.f32 %v1259_v15, %v455_v12  ;;  %v577_v18 = vpop.f32.mrb[9].mxu0  ;;  %v694_v12 = vpop.permute.xlu1 %693 }
 0x2af   :  { %v578_v19 = vadd.f32 %v577_v18, %v450_v13  ;;  %v689_v15 = vpop.permute.xlu0 %688 }
 0x2b0   :  { %v617_v20 = vmax.f32 %v583_v17, 0.0 }
 0x2b1   :  { %v616_v21 = vmax.f32 %v578_v19, 0.0  ;;  %v1262_v22 = vpop.f32.mrb[10].mxu0 }
 0x2b2   :  { %v593_v23 = vadd.f32 %v1262_v22, %v465_v14  ;;  %v587_v24 = vpop.f32.mrb[11].mxu0 }
 0x2b3   :  { %v1376_v26 = vpack.c.bf16 %v617_v20, %v616_v21  ;;  %v588_v27 = vadd.f32 %v587_v24, %v460_v16 }
 0x2b4   :  { %v619_v29 = vmax.f32 %v593_v23, 0.0 }
 0x2b5   :  { %v618_v30 = vmax.f32 %v588_v27, 0.0  ;;  %v1265_v31 = vpop.f32.mrb[12].mxu0  ;;  %1377 = vmatprep.subr.bf16.mxu1 %v1376_v26 }
 0x2b6   :  { %v603_v32 = vadd.f32 %v1265_v31, %v475_v25  ;;  %v597_v33 = vpop.f32.mrb[13].mxu0  ;;  %1379 = vmatpush3.bf16.msra.mxu1 %v1376_v26  ;;  %v704_v25 = vpop.permute.xlu1 %703 }
 0x2b7   :  { %v1380_v34 = vpack.c.bf16 %v619_v29, %v618_v30  ;;  %v598_v35 = vadd.f32 %v597_v33, %v470_v28  ;;  %v699_v28 = vpop.permute.xlu0 %698 }
 0x2b8   :  { %v621_v36 = vmax.f32 %v603_v32, 0.0 }
 0x2b9   :  { %v620_v38 = vmax.f32 %v598_v35, 0.0  ;;  %v1268_v39 = vpop.f32.mrb[14].mxu0  ;;  %1381 = vmatprep.subr.bf16.mxu1 %v1380_v34 }
 0x2ba   :  { %v613_v41 = vadd.f32 %v1268_v39, %v485_v37  ;;  %v607_v42 = vpop.f32.mrb[15].mxu0  ;;  %1383 = vmatpush3.bf16.msra.mxu1 %v1380_v34  ;;  %v714_v37 = vpop.permute.xlu1 %713 }
 0x2bb   :  { %v1384_v43 = vpack.c.bf16 %v621_v36, %v620_v38  ;;  %v608_v44 = vadd.f32 %v607_v42, %v480_v40  ;;  %v709_v40 = vpop.permute.xlu0 %708 }
 0x2bc   :  { %v623_v45 = vmax.f32 %v613_v41, 0.0 }
 0x2bd   :  { %v622_v46 = vmax.f32 %v608_v44, 0.0  ;;  %1385 = vmatprep.subr.bf16.mxu1 %v1384_v43 }
 0x2be   :  { %1387 = vmatpush3.bf16.msra.mxu1 %v1384_v43 }
 0x2bf   :  { %v1388_v47 = vpack.c.bf16 %v623_v45, %v622_v46 }
 0x2c1   :  { %1389 = vmatprep.subr.bf16.mxu1 %v1388_v47 }
 0x2c2   :  { %1391 = vmatpush3.bf16.msra.mxu1 %v1388_v47 }
 0x2c5   :  { %1286 = vmatmul.mubr.msk.f32.vlgmr.msra.gmra.mrb[8].mxu1 %vm293_vm1, %v625_v48 }
 0x2c6   :  { %1288 = vmatprep.mubr.msk.f32.mxu1 %vm293_vm1, %v626_v49 }
 0x2c9   :  { %1289 = vmatmul.mubr.msk.f32.gmra.mrb[10].mxu1 %vm293_vm1, %v627_v50  ;;  %v724_v50 = vpop.permute.xlu1 %723 }
 0x2ca   :  { %1291 = vmatprep.mubr.msk.f32.mxu1 %vm293_vm1, %v628_v51 }
 0x2cd   :  { %1292 = vmatmul.mubr.msk.f32.gmra.mrb[12].mxu1 %vm293_vm1, %v629_v52 }
 0x2ce   :  { %1294 = vmatprep.mubr.msk.f32.mxu1 %vm293_vm1, %v630_v53  ;;  %v719_v53 = vpop.permute.xlu0 %718 }
 0x2d1   :  { %1295 = vmatmul.mubr.msk.f32.gmra.mrb[14].mxu1 %vm293_vm1, %v631_v54 }
 0x2d2   :  { %1297 = vmatprep.mubr.msk.f32.mxu1 %vm293_vm1, %v632_v55 }
 0x2d5   :  { %1298 = vmatmul.mubr.msk.f32.gmra.mrb[16].mxu1 %vm293_vm1, %v633_v56 }
 0x2d6   :  { %1300 = vmatprep.mubr.msk.f32.mxu1 %vm293_vm1, %v634_v57 }
 0x2d9   :  { %1301 = vmatmul.mubr.msk.f32.gmra.mrb[18].mxu1 %vm293_vm1, %v635_v58 }
 0x2da   :  { %1303 = vmatprep.mubr.msk.f32.mxu1 %vm293_vm1, %v636_v59 }
 0x2dd   :  { %1304 = vmatmul.mubr.msk.f32.gmra.mrb[20].mxu1 %vm293_vm1, %v637_v60 }
 0x2de   :  { %1306 = vmatprep.mubr.msk.f32.mxu1 %vm293_vm1, %v638_v61 }
 0x2e1   :  { %1307 = vmatmul.mubr.msk.f32.gmra.mrb[22].mxu1 %vm293_vm1, %v639_v62  ;;  %v734_v62 = vpop.permute.xlu1 %733 }
 0x398   :  { %v1287_v7 = vpop.f32.mrb[8].mxu1 }
 0x399   :  { %v856_v8 = vadd.f32 %v1287_v7, %v664_v1  ;;  %v850_v9 = vpop.f32.mrb[9].mxu1 }
 0x39a   :  { %v851_v10 = vadd.f32 %v850_v9, %v659_v2  ;;  %v729_v2 = vpop.permute.xlu0 %728 }
 0x39b   :  { %v930_v11 = vmax.f32 %v856_v8, 0.0 }
 0x39c   :  { %v929_v13 = vmax.f32 %v851_v10, 0.0  ;;  %v1290_v14 = vpop.f32.mrb[10].mxu1  ;;  %v945_v10 = vld [vmem:[%s1875_s9] sm:$0xff]  ;;  %s1426_s9 = scalar_lea.vmem %s1056_s23, 64 }
 0x39d   :  { %v866_v16 = vadd.f32 %v1290_v14, %v674_v3  ;;  %v860_v17 = vpop.f32.mrb[11].mxu1  ;;  %p1427_p0 = scmp.ne.s32.totalorder %s1056_s23, %s1426_s9  ;;  %p1432_p2 = scmp.lt.s32.totalorder %s1426_s9, %s1426_s9 }
 0x39e   :  { %v1393_v18 = vpack.c.bf16 %v930_v11, %v929_v13  ;;  %v861_v19 = vadd.f32 %v860_v17, %v669_v4  ;;  %v1022_v11 = vlaneseq }
 0x39f   :  { %v932_v20 = vmax.f32 %v866_v16, 0.0  ;;  %p1433_p3 = por %p1432_p2, %p1431_p1 }
 0x3a0   :  { %v931_v21 = vmax.f32 %v861_v19, 0.0  ;;  %v1293_v22 = vpop.f32.mrb[12].mxu1  ;;  %1394 = vmatpush3.bf16.msra.mxu0 %v1393_v18  ;;  %v1029_v13 = vand.u32 127, %v1022_v11 }
 0x3a1   :  { %v876_v23 = vadd.f32 %v1293_v22, %v684_v5  ;;  %v870_v24 = vpop.f32.mrb[13].mxu1  ;;  %1395 = vmatprep.subr.bf16.mxu0 %v1475_v63  ;;  %p1434_p4 = pnand %p1433_p3, %p1427_p0 }
 0x3a2   :  { %v1396_v26 = vpack.c.bf16 %v932_v20, %v931_v21  ;;  %v871_v27 = vadd.f32 %v870_v24, %v679_v6  ;;  %vm1033_vm3 = vcmp.lt.s32.totalorder %v1029_v13, 2 }
 0x3a3   :  { %v934_v29 = vmax.f32 %v876_v23, 0.0 }
 0x3a4   :  { %v933_v30 = vmax.f32 %v871_v27, 0.0  ;;  %v1296_v31 = vpop.f32.mrb[14].mxu1  ;;  %1397 = vmatpush3.bf16.msra.mxu0 %v1396_v26 }
 0x3a5   :  { %v886_v32 = vadd.f32 %v1296_v31, %v694_v12  ;;  %v880_v33 = vpop.f32.mrb[15].mxu1  ;;  %1398 = vmatprep.subr.bf16.mxu0 %v1475_v63  ;;  %v1023_v12 = vshrl.u32 %v1022_v11, 7 }
 0x3a6   :  { %v1399_v34 = vpack.c.bf16 %v934_v29, %v933_v30  ;;  %v881_v35 = vadd.f32 %v880_v33, %v689_v15  ;;  %v950_v15 = vpop.permute.xlu0 %949 }
 0x3a7   :  { %v936_v36 = vmax.f32 %v886_v32, 0.0  ;;  %v1024_v14 = vsub.s32 4, %v1023_v12 }
 0x3a8   :  { %v935_v38 = vmax.f32 %v881_v35, 0.0  ;;  %v1299_v39 = vpop.f32.mrb[16].mxu1  ;;  %1400 = vmatpush3.bf16.msra.mxu0 %v1399_v34 }
 0x3a9   :  { %v896_v41 = vadd.f32 %v1299_v39, %v704_v25  ;;  %v890_v42 = vpop.f32.mrb[17].mxu1  ;;  %1401 = vmatprep.subr.bf16.mxu0 %v1475_v63 }
 0x3aa   :  { %v1402_v43 = vpack.c.bf16 %v936_v36, %v935_v38  ;;  %v891_v44 = vadd.f32 %v890_v42, %v699_v28 }
 0x3ab   :  { %v938_v45 = vmax.f32 %v896_v41, 0.0 }
 0x3ac   :  { %v937_v46 = vmax.f32 %v891_v44, 0.0  ;;  %v1302_v47 = vpop.f32.mrb[18].mxu1  ;;  %1403 = vmatpush3.bf16.msra.mxu0 %v1402_v43 }
 0x3ad   :  { %v906_v48 = vadd.f32 %v1302_v47, %v714_v37  ;;  %v900_v49 = vpop.f32.mrb[19].mxu1  ;;  %1404 = vmatprep.subr.bf16.mxu0 %v1475_v63 }
 0x3ae   :  { %v1405_v51 = vpack.c.bf16 %v938_v45, %v937_v46  ;;  %v901_v52 = vadd.f32 %v900_v49, %v709_v40 }
 0x3af   :  { %v940_v54 = vmax.f32 %v906_v48, 0.0 }
 0x3b0   :  { %v939_v55 = vmax.f32 %v901_v52, 0.0  ;;  %v1305_v56 = vpop.f32.mrb[20].mxu1  ;;  %1406 = vmatpush3.bf16.msra.mxu0 %v1405_v51 }
 0x3b1   :  { %v916_v57 = vadd.f32 %v1305_v56, %v724_v50  ;;  %v910_v58 = vpop.f32.mrb[21].mxu1  ;;  %1407 = vmatprep.subr.bf16.mxu0 %v1475_v63 }
 0x3b2   :  { %v1408_v59 = vpack.c.bf16 %v940_v54, %v939_v55  ;;  %v911_v60 = vadd.f32 %v910_v58, %v719_v53 }
 0x3b3   :  { %v942_v61 = vmax.f32 %v916_v57, 0.0 }
 0x3b4   :  { %v941_v0 = vmax.f32 %v911_v60, 0.0  ;;  %v1308_v1 = vpop.f32.mrb[22].mxu1  ;;  %1409 = vmatpush3.bf16.msra.mxu0 %v1408_v59 }
 0x3b5   :  { %v926_v3 = vadd.f32 %v1308_v1, %v734_v62  ;;  %v920_v4 = vpop.f32.mrb[23].mxu1  ;;  %1410 = vmatprep.subr.bf16.mxu0 %v1475_v63 }
 0x3b6   :  { %v1411_v5 = vpack.c.bf16 %v942_v61, %v941_v0  ;;  %v921_v6 = vadd.f32 %v920_v4, %v729_v2 }
 0x3b7   :  { %v944_v7 = vmax.f32 %v926_v3, 0.0 }
 0x3b8   :  { %v943_v8 = vmax.f32 %v921_v6, 0.0  ;;  %1412 = vmatpush3.bf16.msra.mxu0 %v1411_v5 }
 0x3b9   :  { %1413 = vmatprep.subr.bf16.mxu0 %v1475_v63 }
 0x3ba   :  { %v1414_v9 = vpack.c.bf16 %v944_v7, %v943_v8 }
 0x3bc   :  { %1415 = vmatpush3.bf16.msra.mxu0 %v1414_v9 }
 0x3bf   :  { %1342 = vmatmul.mubr.f32.vlgmr.msra.gmra.mrb[16].mxu0 %v945_v10 }
 0x492   :  { %v1018_v16 = vpop.f32.mrb[16].mxu0 }
 0x493   :  { %v1019_v17 = vadd.f32 %v1018_v16, %v950_v15  ;;  %v1343_v18 = vpop.f32.mrb[17].mxu0 }
 0x495   :  { %v1034_v19 = vsel %vm1033_vm3, %v1019_v17, 0.0  ;;  %v1025_v20 = vrot.slane %v1019_v17, %v1024_v14 }
 0x496   :  { %v1036_v63 = vsel %vm1035_vm4, %v1034_v19, 0.0 }
 0x497   :  { %1037 = vadd.xlane.f32.xlu1 %v1036_v63  ;;  %v1026_v21 = vadd.f32 %v1025_v20, %v1019_v17 }
 0x499   :  { %1027 = vst [vmem:[#allocation2] sm:$0xf] %v1026_v21 }
 0x49a   :  { %1437 = shalt.err (!%p1434_p4)
}
 0x49b   :  { %s1438_s26 = scalar_lea.hbm %s1877_s11, 64 }
 0x49c   :  { %p1439_p5 = scmp.ne.s32.totalorder %s1877_s11, %s1438_s26  ;;  %p1442_p6 = scmp.lt.u32.totalorder %s1438_s26, %s1877_s11 }
 0x49e   :  { %p1444_p7 = pnand %p1442_p6, %p1439_p5 }
 0x4a0   :  { %1447 = shalt.err (!%p1444_p7)
}
 0x4a1   :  { %1058 = dma.vmem_to_hbm [thread:$0]  %s1056_s23, 64, %s1877_s11, [#allocation3]  }
 0x4a2   :  { %s1479_s13 = smov [#allocation4]  }
 0x4a3   :  { %s1065_s6 = sshll.u32 %s1479_s13, 4  ;;  %s1066_s6 = int_to_ptr.vmem [resolvable:$true] %s1065_s6 }
 0x4a4   :  { %s1448_s15 = scalar_lea.vmem %s1066_s6, 128  ;;  %p1453_p9 = scmp.lt.s32.totalorder %s1066_s6, %s1066_s6 }
 0x4a5   :  { %p1449_p8 = scmp.ne.s32.totalorder %s1066_s6, %s1448_s15  ;;  %p1454_p10 = scmp.lt.s32.totalorder %s1448_s15, %s1448_s15 }
 0x4a7   :  { %p1455_p11 = por %p1454_p10, %p1453_p9 }
 0x4a9   :  { %p1456_p12 = pnand %p1455_p11, %p1449_p8 }
 0x524   :  { %v1038_v22 = vpop.xlane.xlu1 %1037 }
 0x525   :  { %v1039_v23 = vrot.slane %v1038_v22, 4 }
 0x527   :  { %v1040_v24 = vadd.f32 %v1039_v23, %v1038_v22 }
 0x529   :  { %v1041_v25 = vrot.slane %v1040_v24, 2 }
 0x52b   :  { %v1042_v26 = vadd.f32 %v1041_v25, %v1040_v24 }
 0x52d   :  { %v1043_v27 = vrot.slane %v1042_v26, 1 }
 0x52f   :  { %v1044_v28 = vadd.f32 %v1043_v27, %v1042_v26 }
 0x531   :  { %1416 = vpush %v1044_v28 }
 0x562   :  { %s1417_s14 = spop %1416 }
 0x563   :  { %v1046_v29 = vstv %s1417_s14 }
 0x564   :  { %1048 = vst [vmem:[#allocation4] sm:$0xff] %v1046_v29 }
 0x565   :  { %1459 = shalt.err (!%p1456_p12)
}
 0x566   :  { %s1460_s17 = scalar_lea.hbm %s1878_s12, 128 }
 0x567   :  { %p1461_p13 = scmp.ne.s32.totalorder %s1878_s12, %s1460_s17  ;;  %p1464_p0 = scmp.lt.u32.totalorder %s1460_s17, %s1878_s12 }
 0x569   :  { %p1466_p1 = pnand %p1464_p0, %p1461_p13 }
 0x56b   :  { %1469 = shalt.err (!%p1466_p1)
}
 0x56c   :  { %1068 = dma.vmem_to_hbm [thread:$0]  %s1066_s6, 128, %s1878_s12, [#allocation5]  }
 0x56d   :  { %1470 = dma.done.wait [#allocation3], 64  }
 0x56e   :  { %1471 = vsyncadd [#allocation3], 4294967232 }
 0x56f   :  { %1472 = dma.done.wait [#allocation5], 128  }
 0x570   :  { %1473 = vsyncadd [#allocation5], 4294967168 }
 0x571   :  { %1075 = vsyncpa [#allocation3], 1 }
 0x572   :  { %1076 = vsyncpa [#allocation5], 1 }

</bundles_post_ra>
